<compile_context>
chip_gen: v7x
topology: tpu7x:2x2x1
jax: 0.10.0
libtpu: 0.0.40
codegen_flags: <defaults>
</compile_context>

<pallas_src>
import functools

import numpy as np
import jax
import jax.numpy as jnp
from jax.experimental import pallas as pl
from jax.experimental.pallas import tpu as pltpu


def _margin_loss_kernel(logits_ref, labels_ref, out_ref, num_acc, den_acc,
                        *, n_total, epsilon):
    pid = pl.program_id(0)
    n_steps = pl.num_programs(0)

    @pl.when(pid == 0)
    def _init():
        num_acc[...] = jnp.zeros_like(num_acc)
        den_acc[...] = jnp.zeros_like(den_acc)

    logits = logits_ref[...].astype(jnp.float32)        # (TM, C)
    labels = labels_ref[...]                            # (TM, 1) int32
    tm, c = logits.shape

    # log-softmax pieces; softmax itself is never materialized.
    m = jnp.max(logits, axis=1, keepdims=True)          # (TM, 1)
    shifted = logits - m
    lse = jnp.log(jnp.sum(jnp.exp(shifted), axis=1, keepdims=True))  # (TM, 1)

    class_iota = jax.lax.broadcasted_iota(jnp.int32, (tm, c), 1)
    onehot = class_iota == labels                        # (TM, C) bool
    shifted_at_label = jnp.sum(jnp.where(onehot, shifted, 0.0),
                               axis=1, keepdims=True)    # (TM, 1)
    ce = lse - shifted_at_label                          # per-sample cross-entropy

    # prediction = first index attaining the row max (torch.max tie-break).
    iota_f = class_iota.astype(jnp.float32)
    pred = jnp.min(jnp.where(logits == m, iota_f, jnp.float32(c)),
                   axis=1, keepdims=True)                # (TM, 1) f32
    err = (pred != labels.astype(jnp.float32)).astype(jnp.float32)

    # mask padded rows of the (possibly ragged) last tile
    row_ids = pid * tm + jax.lax.broadcasted_iota(jnp.int32, (tm, 1), 0)
    err = err * (row_ids < n_total).astype(jnp.float32)

    # cheap sublane-only partial reductions, accumulated across grid steps
    num_acc[...] += jnp.sum(err * ce, axis=0, keepdims=True)
    den_acc[...] += jnp.sum(err, axis=0, keepdims=True)

    @pl.when(pid == n_steps - 1)
    def _finalize():
        out_ref[...] = num_acc[...] / (den_acc[...] + epsilon)


def _round_up(x, m):
    return (x + m - 1) // m * m


def margin_loss(logits, labels, epsilon=1e-8, tile_rows=None):
    """Pallas TPU implementation of MarginLoss.forward. Returns a f32 scalar."""
    n, c = logits.shape
    labels_2d = labels.astype(jnp.int32).reshape(n, 1)

    dtype_bytes = jnp.dtype(logits.dtype).itemsize
    if tile_rows is None:
        # ~8 MiB budget: 2 double-buffered input copies + ~6 live f32 (TM, C)
        # temporaries.  Safe on v5e/v6e (128 MiB VMEM) and v7x (64 MiB).
        budget = 8 * 1024 * 1024
        per_row = c * (2 * dtype_bytes + 6 * 4) + 64
        tile_rows = max(8, min(1024, budget // per_row))
    tile_rows = max(8, (int(tile_rows) // 8) * 8)
    tile_rows = min(tile_rows, _round_up(n, 8))

    n_pad = _round_up(n, tile_rows)
    if n_pad != n:
        logits = jnp.pad(logits, ((0, n_pad - n), (0, 0)))
        labels_2d = jnp.pad(labels_2d, ((0, n_pad - n), (0, 0)))

    grid = (n_pad // tile_rows,)
    kernel = functools.partial(_margin_loss_kernel,
                               n_total=n, epsilon=float(epsilon))

    cost = pl.CostEstimate(
        flops=10 * n * c,
        transcendentals=n * (c + 1),
        bytes_accessed=n * c * dtype_bytes + n * 4 + 4,
    )

    out = pl.pallas_call(
        kernel,
        out_shape=jax.ShapeDtypeStruct((1, 1), jnp.float32),
        grid=grid,
        in_specs=[
            pl.BlockSpec((tile_rows, c), lambda i: (i, 0)),
            pl.BlockSpec((tile_rows, 1), lambda i: (i, 0)),
        ],
        out_specs=pl.BlockSpec((1, 1), lambda i: (0, 0)),
        scratch_shapes=[
            pltpu.VMEM((1, 1), jnp.float32),   # numerator accumulator
            pltpu.VMEM((1, 1), jnp.float32),   # denominator accumulator
        ],
        compiler_params=pltpu.CompilerParams(
            dimension_semantics=("arbitrary",),
        ),
        cost_estimate=cost,
    )(logits, labels_2d)
    return out[0, 0]


def _margin_loss_ref(logits, labels, epsilon=1e-8):
    """Pure-JAX reference (mirrors the PyTorch module) for correctness check."""
    logits = logits.astype(jnp.float32)
    log_probs = jax.nn.log_softmax(logits, axis=1)
    preds = jnp.argmax(logits, axis=1)
    err = 1.0 - (preds == labels).astype(jnp.float32)
    ce = -jnp.take_along_axis(log_probs, labels[:, None].astype(jnp.int32),
                              axis=1)[:, 0]
    return jnp.sum(err * ce) / (jnp.sum(err) + epsilon)


if __name__ == "__main__":
    key = jax.random.PRNGKey(0)
    k1, k2, k3, k4 = jax.random.split(key, 4)

    # Case 1: small batch of logits over 8 classes (single grid step).
    N, C = 16, 8
    logits = jax.random.normal(k1, (N, C), dtype=jnp.float32)
    labels = jax.random.randint(k2, (N,), 0, C, dtype=jnp.int32)
    out = jax.block_until_ready(margin_loss(logits, labels))
    ref = jax.block_until_ready(_margin_loss_ref(logits, labels))
    assert np.allclose(np.asarray(out), np.asarray(ref), atol=1e-5, rtol=1e-5), (
        out, ref)

    # Case 2: multi-step grid with a ragged last tile (N not a tile multiple).
    N2, C2 = 300, 10
    logits2 = jax.random.normal(k3, (N2, C2), dtype=jnp.float32)
    labels2 = jax.random.randint(k4, (N2,), 0, C2, dtype=jnp.int32)
    out2 = jax.block_until_ready(margin_loss(logits2, labels2, tile_rows=128))
    ref2 = jax.block_until_ready(_margin_loss_ref(logits2, labels2))
    assert np.allclose(np.asarray(out2), np.asarray(ref2), atol=1e-5, rtol=1e-5), (
        out2, ref2)

    print("KERNEL_OK")
</pallas_src>

<mosaic_0001>
module attributes {stable_mosaic.version = 11 : i64} {
  func.func @_margin_loss_kernel(%arg0: i32, %arg1: memref<16x8xf32, #tpu.memory_space<vmem>>, %arg2: memref<16x1xi32, #tpu.memory_space<vmem>>, %arg3: memref<1x1xf32, #tpu.memory_space<vmem>>, %arg4: memref<1x1xf32, #tpu.memory_space<vmem>>, %arg5: memref<1x1xf32, #tpu.memory_space<vmem>>) attributes {dimension_semantics = [#tpu.dimension_semantics<arbitrary>], iteration_bounds = array<i64: 1>, scalar_prefetch = 0 : i64, scratch_operands = 2 : i64, tpu.core_type = #tpu.core_type<tc>, window_params = [{transform_indices = @transform_0, window_bounds = array<i64: 16, 8>}, {transform_indices = @transform_1, window_bounds = array<i64: 16, 1>}, {pipeline_mode = #tpu.pipeline_mode<synchronous>, transform_indices = @transform_2, window_bounds = array<i64: 1, 1>}]} {
    %c0_i32 = arith.constant 0 : i32
    %0 = arith.cmpi eq, %arg0, %c0_i32 : i32
    %1 = arith.extui %0 : i1 to i32
    %c0_i32_0 = arith.constant 0 : i32
    %2 = arith.cmpi ne, %1, %c0_i32_0 : i32
    scf.if %2 {
      %cst_22 = arith.constant 0.000000e+00 : f32
      %55 = vector.broadcast %cst_22 : f32 to vector<1x1xf32>
      %c0_23 = arith.constant 0 : index
      %c0_24 = arith.constant 0 : index
      %56 = vector.load %arg4[%c0_23, %c0_24] : memref<1x1xf32, #tpu.memory_space<vmem>>, vector<1x1xf32>
      tpu.vector_store %arg4[%c0_23, %c0_24], %55 {strides = array<i32>} : memref<1x1xf32, #tpu.memory_space<vmem>>, vector<1x1xf32>,
      %cst_25 = arith.constant 0.000000e+00 : f32
      %57 = vector.broadcast %cst_25 : f32 to vector<1x1xf32>
      %c0_26 = arith.constant 0 : index
      %c0_27 = arith.constant 0 : index
      %58 = vector.load %arg5[%c0_26, %c0_27] : memref<1x1xf32, #tpu.memory_space<vmem>>, vector<1x1xf32>
      tpu.vector_store %arg5[%c0_26, %c0_27], %57 {strides = array<i32>} : memref<1x1xf32, #tpu.memory_space<vmem>>, vector<1x1xf32>,
    } else {
    }
    %c0 = arith.constant 0 : index
    %c0_1 = arith.constant 0 : index
    %3 = vector.load %arg1[%c0, %c0_1] : memref<16x8xf32, #tpu.memory_space<vmem>>, vector<16x8xf32>
    %c0_2 = arith.constant 0 : index
    %c0_3 = arith.constant 0 : index
    %4 = vector.load %arg2[%c0_2, %c0_3] : memref<16x1xi32, #tpu.memory_space<vmem>>, vector<16x1xi32>
    %cst = arith.constant dense<0xFF800000> : vector<16xf32>
    %5 = vector.multi_reduction <maximumf>, %3, %cst [1] : vector<16x8xf32> to vector<16xf32>
    %6 = vector.shape_cast %5 : vector<16xf32> to vector<16x1xf32>
    %7 = vector.broadcast %6 : vector<16x1xf32> to vector<16x8xf32>
    %8 = arith.subf %3, %7 : vector<16x8xf32>
    %9 = math.exp %8 : vector<16x8xf32>
    %cst_4 = arith.constant dense<0.000000e+00> : vector<16xf32>
    %10 = vector.multi_reduction <add>, %9, %cst_4 [1] : vector<16x8xf32> to vector<16xf32>
    %11 = vector.shape_cast %10 : vector<16xf32> to vector<16x1xf32>
    %12 = math.log %11 : vector<16x1xf32>
    %13 = tpu.iota {dimensions = array<i32: 1>} : vector<16x8xi32>
    %14 = vector.broadcast %4 : vector<16x1xi32> to vector<16x8xi32>
    %15 = arith.cmpi eq, %13, %14 : vector<16x8xi32>
    %cst_5 = arith.constant 0.000000e+00 : f32
    %16 = vector.broadcast %cst_5 : f32 to vector<16x8xf32>
    %17 = arith.select %15, %8, %16 : vector<16x8xi1>, vector<16x8xf32>
    %cst_6 = arith.constant dense<0.000000e+00> : vector<16xf32>
    %18 = vector.multi_reduction <add>, %17, %cst_6 [1] : vector<16x8xf32> to vector<16xf32>
    %19 = vector.shape_cast %18 : vector<16xf32> to vector<16x1xf32>
    %20 = arith.subf %12, %19 : vector<16x1xf32>
    %21 = arith.sitofp %13 : vector<16x8xi32> to vector<16x8xf32>
    %22 = vector.broadcast %6 : vector<16x1xf32> to vector<16x8xf32>
    %23 = arith.cmpf oeq, %3, %22 : vector<16x8xf32>
    %cst_7 = arith.constant 8.000000e+00 : f32
    %24 = vector.broadcast %cst_7 : f32 to vector<16x8xf32>
    %25 = arith.select %23, %21, %24 : vector<16x8xi1>, vector<16x8xf32>
    %cst_8 = arith.constant dense<0x7F800000> : vector<16xf32>
    %26 = vector.multi_reduction <minimumf>, %25, %cst_8 [1] : vector<16x8xf32> to vector<16xf32>
    %27 = vector.shape_cast %26 : vector<16xf32> to vector<16x1xf32>
    %28 = arith.sitofp %4 : vector<16x1xi32> to vector<16x1xf32>
    %29 = arith.cmpf one, %27, %28 : vector<16x1xf32>
    %30 = arith.extui %29 : vector<16x1xi1> to vector<16x1xi32>
    %31 = arith.sitofp %30 : vector<16x1xi32> to vector<16x1xf32>
    %c16_i32 = arith.constant 16 : i32
    %32 = arith.muli %arg0, %c16_i32 : i32
    %33 = tpu.iota {dimensions = array<i32: 0>} : vector<16x1xi32>
    %34 = vector.broadcast %32 : i32 to vector<16x1xi32>
    %35 = arith.addi %34, %33 : vector<16x1xi32>
    %c16_i32_9 = arith.constant 16 : i32
    %36 = vector.broadcast %c16_i32_9 : i32 to vector<16x1xi32>
    %37 = arith.cmpi slt, %35, %36 : vector<16x1xi32>
    %38 = arith.extui %37 : vector<16x1xi1> to vector<16x1xi32>
    %39 = arith.sitofp %38 : vector<16x1xi32> to vector<16x1xf32>
    %40 = arith.mulf %31, %39 : vector<16x1xf32>
    %c0_10 = arith.constant 0 : index
    %c0_11 = arith.constant 0 : index
    %41 = vector.load %arg4[%c0_10, %c0_11] : memref<1x1xf32, #tpu.memory_space<vmem>>, vector<1x1xf32>
    %42 = arith.mulf %40, %20 : vector<16x1xf32>
    %cst_12 = arith.constant dense<0.000000e+00> : vector<1xf32>
    %43 = vector.multi_reduction <add>, %42, %cst_12 [0] : vector<16x1xf32> to vector<1xf32>
    %44 = vector.shape_cast %43 : vector<1xf32> to vector<1x1xf32>
    %45 = arith.addf %41, %44 : vector<1x1xf32>
    %c0_13 = arith.constant 0 : index
    %c0_14 = arith.constant 0 : index
    %46 = vector.load %arg4[%c0_13, %c0_14] : memref<1x1xf32, #tpu.memory_space<vmem>>, vector<1x1xf32>
    tpu.vector_store %arg4[%c0_13, %c0_14], %45 {strides = array<i32>} : memref<1x1xf32, #tpu.memory_space<vmem>>, vector<1x1xf32>,
    %c0_15 = arith.constant 0 : index
    %c0_16 = arith.constant 0 : index
    %47 = vector.load %arg5[%c0_15, %c0_16] : memref<1x1xf32, #tpu.memory_space<vmem>>, vector<1x1xf32>
    %cst_17 = arith.constant dense<0.000000e+00> : vector<1xf32>
    %48 = vector.multi_reduction <add>, %40, %cst_17 [0] : vector<16x1xf32> to vector<1xf32>
    %49 = vector.shape_cast %48 : vector<1xf32> to vector<1x1xf32>
    %50 = arith.addf %47, %49 : vector<1x1xf32>
    %c0_18 = arith.constant 0 : index
    %c0_19 = arith.constant 0 : index
    %51 = vector.load %arg5[%c0_18, %c0_19] : memref<1x1xf32, #tpu.memory_space<vmem>>, vector<1x1xf32>
    tpu.vector_store %arg5[%c0_18, %c0_19], %50 {strides = array<i32>} : memref<1x1xf32, #tpu.memory_space<vmem>>, vector<1x1xf32>,
    %c0_i32_20 = arith.constant 0 : i32
    %52 = arith.cmpi eq, %arg0, %c0_i32_20 : i32
    %53 = arith.extui %52 : i1 to i32
    %c0_i32_21 = arith.constant 0 : i32
    %54 = arith.cmpi ne, %53, %c0_i32_21 : i32
    scf.if %54 {
      %c0_22 = arith.constant 0 : index
      %c0_23 = arith.constant 0 : index
      %55 = vector.load %arg4[%c0_22, %c0_23] : memref<1x1xf32, #tpu.memory_space<vmem>>, vector<1x1xf32>
      %c0_24 = arith.constant 0 : index
      %c0_25 = arith.constant 0 : index
      %56 = vector.load %arg5[%c0_24, %c0_25] : memref<1x1xf32, #tpu.memory_space<vmem>>, vector<1x1xf32>
      %cst_26 = arith.constant 9.99999993E-9 : f32
      %57 = vector.broadcast %cst_26 : f32 to vector<1x1xf32>
      %58 = arith.addf %56, %57 : vector<1x1xf32>
      %59 = arith.divf %55, %58 : vector<1x1xf32>
      %c0_27 = arith.constant 0 : index
      %c0_28 = arith.constant 0 : index
      %60 = vector.load %arg3[%c0_27, %c0_28] : memref<1x1xf32, #tpu.memory_space<vmem>>, vector<1x1xf32>
      tpu.vector_store %arg3[%c0_27, %c0_28], %59 {strides = array<i32>} : memref<1x1xf32, #tpu.memory_space<vmem>>, vector<1x1xf32>,
    } else {
    }
    return
  }
  func.func @transform_0(%arg0: i32) -> (i32, i32) {
    %c0_i32 = arith.constant 0 : i32
    %c0_i32_0 = arith.constant 0 : i32
    return %arg0, %c0_i32 : i32, i32
  }
  func.func @transform_1(%arg0: i32) -> (i32, i32) {
    %c0_i32 = arith.constant 0 : i32
    %c0_i32_0 = arith.constant 0 : i32
    return %arg0, %c0_i32 : i32, i32
  }
  func.func @transform_2(%arg0: i32) -> (i32, i32) {
    %c0_i32 = arith.constant 0 : i32
    %c0_i32_0 = arith.constant 0 : i32
    %c0_i32_1 = arith.constant 0 : i32
    return %c0_i32, %c0_i32_0 : i32, i32
  }
}

</mosaic_0001>

<bundles_post_ra>
// kernel: tpu_custom_call.1
= control target key start
LH: loop header
LB: loop body
LE: loop exit
PB: predicated region body
PF: predicated region fallthrough
CT: control target
= control target key end

     0   :  { %vm23_vm0 = vcmask 64512   ;;  %v192_v4 = vmov 0   ;;  %s251_s0 = inlined_call_operand.vmem [shape: f32[16,8], index: 0, kind: input, shape index: {}]   ;;  %s252_s1 = inlined_call_operand.vmem [shape: s32[16,1], index: 1, kind: input, shape index: {}]   ;;  %s253_s2 = inlined_call_operand.hbm [shape: f32[1,1], index: 2, kind: output, shape index: {}]  }
   0x1   :  { %v19_v0 = vld [vmem:[%s251_s0] sm:$0xff]  ;;  %v20_v1 = vld [vmem:[%s251_s0 + $0x8] sm:$0xff]  ;;  %156 = vset.pattern.permute.xlu1 %v192_v4  ;;  %157 = vset.pattern.permute.xlu0 %v192_v4 }
   0x2   :  { %v21_v2 = vld [vmem:[%s252_s1] sm:$0xff]  ;;  %v24_v3 = vsel %vm23_vm0, %v19_v0, -inf }
   0x3   :  { %7 = vsyncpa [#allocation5], 0  ;;  %25 = vmax.xlane.f32.xlu0 %v24_v3  ;;  %49 = vperm.xlu1 %156, %v21_v2   ;;  %v27_v5 = vsel %vm23_vm0, %v20_v1, -inf  ;;  %v22_v6 = vld [vmem:[%s252_s1 + $0x8] sm:$0xff]  ;;  %v46_v11 = vlaneseq  ;;  %vm16_vm5 = vcmask 0   ;;  %v193_v30 = vmov 0.0  }
   0x4   :  { %17 = vst.msk [vmem:[#allocation2] sm:$0x1] %vm16_vm5, %v193_v30  ;;  %18 = vst.msk [vmem:[#allocation3] sm:$0x1] %vm16_vm5, %v193_v30  ;;  %v77_v32 = vcvt.s32.f32 %v21_v2  ;;  %v78_v35 = vcvt.s32.f32 %v22_v6  ;;  %vm103_vm7 = vcmask 7168   ;;  %s194_s0 = smov [#allocation4]  }
   0x5   :  { %v47_v14 = vand.u32 127, %v46_v11  ;;  %s143_s1 = sshll.u32 %s194_s0, 4  ;;  %s144_s1 = int_to_ptr.vmem [resolvable:$true] %s143_s1 }
   0x6   :  { %s168_s17 = scalar_lea.vmem %s144_s1, 16  ;;  %s172_s18 = scalar_lea.vmem %s144_s1, 32 }
   0x7   :  { %28 = vmax.xlane.f32.xlu0 %v27_v5  ;;  %52 = vperm.xlu1 %156, %v22_v6   ;;  %v66_v15 = vcvt.s32.f32 %v47_v14  ;;  %p169_p0 = scmp.ne.s32.totalorder %s144_s1, %s168_s17  ;;  %p173_p1 = scmp.lt.s32.totalorder %s144_s1, %s144_s1 }
   0x8   :  { %p174_p2 = scmp.lt.s32.totalorder %s172_s18, %s168_s17 }
   0xa   :  { %p175_p3 = por %p174_p2, %p173_p1 }
   0xb   :  { %v116_v60 = vld [vmem:[#allocation3] sm:$0x1]  ;;  %v100_v4 = vld [vmem:[#allocation2] sm:$0x1] }
   0xc   :  { %p176_p4 = pnand %p175_p3, %p169_p0 }
  0x82   :  { %v50_v20 = vpop.permute.xlu1 %49 }
  0x83   :  { %vm54_vm3 = vcmp.eq.s32.totalorder %v47_v14, %v50_v20 }
  0x86   :  { %v53_v24 = vpop.permute.xlu1 %52 }
  0x87   :  { %vm55_vm4 = vcmp.eq.s32.totalorder %v47_v14, %v53_v24 }
  0x90   :  { %v26_v7 = vpop.xlane.xlu0 %25 }
  0x91   :  { %v30_v8 = vsub.f32 %v19_v0, %v26_v7  ;;  %vm67_vm1 = vcmp.eq.f32.partialorder %v19_v0, %v26_v7 }
  0x92   :  { %v69_v18 = vsel %vm67_vm1, %v66_v15, 8.0 }
  0x93   :  { %v32_v9 = vmul.f32 1.442695, %v30_v8  ;;  %v71_v21 = vsel %vm23_vm0, %v69_v18, inf  ;;  %v56_v26 = vsel %vm54_vm3, %v30_v8, 0.0 }
  0x94   :  { %v29_v10 = vpop.xlane.xlu0 %28  ;;  %v58_v27 = vsel %vm23_vm0, %v56_v26, 0.0 }
  0x95   :  { %158 = vpow2.f32 %v32_v9  ;;  %v31_v12 = vsub.f32 %v20_v1, %v29_v10  ;;  %vm68_vm2 = vcmp.eq.f32.partialorder %v20_v1, %v29_v10 }
  0x96   :  { %v70_v23 = vsel %vm68_vm2, %v66_v15, 8.0 }
  0x97   :  { %v34_v13 = vmul.f32 1.442695, %v31_v12  ;;  %v74_v25 = vsel %vm23_vm0, %v70_v23, inf  ;;  %v57_v28 = vsel %vm55_vm4, %v31_v12, 0.0 }
  0x98   :  { %v61_v29 = vsel %vm23_vm0, %v57_v28, 0.0 }
  0x99   :  { %160 = vpow2.f32 %v34_v13 }
  0x9f   :  { %v159_v16 = vpop.eup %158 }
  0xa0   :  { %v36_v17 = vsel %vm23_vm0, %v159_v16, 0.0 }
  0xa1   :  { %37 = vadd.xlane.f32.xlu0 %v36_v17 }
  0xa3   :  { %v161_v19 = vpop.eup %160 }
  0xa4   :  { %v39_v22 = vsel %vm23_vm0, %v161_v19, 0.0 }
  0xa5   :  { %72 = vmin.xlane.f32.xlu0 %v71_v21  ;;  %40 = vadd.xlane.f32.xlu1 %v39_v22 }
  0xa9   :  { %75 = vmin.xlane.f32.xlu0 %v74_v25 }
  0xad   :  { %59 = vadd.xlane.f32.xlu0 %v58_v27 }
  0xb1   :  { %62 = vadd.xlane.f32.xlu0 %v61_v29 }
 0x12e   :  { %v38_v31 = vpop.xlane.xlu0 %37 }
 0x12f   :  { %162 = vlog2.f32 %v38_v31 }
 0x132   :  { %v41_v33 = vpop.xlane.xlu1 %40  ;;  %v73_v34 = vpop.xlane.xlu0 %72 }
 0x133   :  { %164 = vlog2.f32 %v41_v33  ;;  %vm79_vm6 = vcmp.ne.f32.partialorder %v73_v34, %v77_v32 }
 0x134   :  { %v151_v36 = vsel %vm79_vm6, 1.0, %v193_v30 }
 0x135   :  { %v117_v40 = vsel %vm103_vm7, %v151_v36, 0.0 }
 0x136   :  { %v76_v37 = vpop.xlane.xlu0 %75 }
 0x137   :  { %vm80_vm8 = vcmp.ne.f32.partialorder %v76_v37, %v78_v35 }
 0x138   :  { %v152_v38 = vsel %vm80_vm8, 1.0, %v193_v30 }
 0x139   :  { %v163_v39 = vpop.eup %162  ;;  %v118_v41 = vsel %vm103_vm7, %v152_v38, 0.0 }
 0x13a   :  { %v119_v42 = vadd.f32 %v118_v41, %v117_v40  ;;  %v43_v43 = vmul.f32 0.6931472, %v163_v39  ;;  %v60_v44 = vpop.xlane.xlu0 %59 }
 0x13c   :  { %v120_v45 = vrot.slane %v119_v42, 4  ;;  %v64_v46 = vsub.f32 %v43_v43, %v60_v44 }
 0x13d   :  { %v165_v47 = vpop.eup %164 }
 0x13e   :  { %v121_v48 = vadd.f32 %v120_v45, %v119_v42  ;;  %v45_v49 = vmul.f32 0.6931472, %v165_v47  ;;  %v63_v50 = vpop.xlane.xlu0 %62  ;;  %v101_v52 = vmul.f32 %v151_v36, %v64_v46 }
 0x140   :  { %v122_v51 = vrot.slane %v121_v48, 2  ;;  %v65_v53 = vsub.f32 %v45_v49, %v63_v50  ;;  %v104_v57 = vsel %vm103_vm7, %v101_v52, 0.0 }
 0x142   :  { %v123_v54 = vadd.f32 %v122_v51, %v121_v48  ;;  %v102_v55 = vmul.f32 %v152_v38, %v65_v53 }
 0x144   :  { %v124_v56 = vrot.slane %v123_v54, 1  ;;  %v105_v58 = vsel %vm103_vm7, %v102_v55, 0.0 }
 0x145   :  { %v106_v59 = vadd.f32 %v105_v58, %v104_v57 }
 0x146   :  { %v125_v61 = vadd.f32 %v124_v56, %v123_v54 }
 0x147   :  { %v107_v62 = vrot.slane %v106_v59, 4 }
 0x148   :  { %v126_v63 = vadd.f32 %v125_v61, %v116_v60 }
 0x149   :  { %v108_v0 = vadd.f32 %v107_v62, %v106_v59 }
 0x14a   :  { %127 = vst.msk [vmem:[#allocation3] sm:$0x1] %vm16_vm5, %v126_v63 }
 0x14b   :  { %v109_v1 = vrot.slane %v108_v0, 2 }
 0x14d   :  { %v110_v2 = vadd.f32 %v109_v1, %v108_v0 }
 0x14f   :  { %v111_v3 = vrot.slane %v110_v2, 1 }
 0x151   :  { %v112_v5 = vadd.f32 %v111_v3, %v110_v2  ;;  %v132_v6 = vld [vmem:[#allocation3] sm:$0x1] }
 0x152   :  { %v133_v7 = vadd.f32 1e-08, %v132_v6 }
 0x153   :  { %v113_v8 = vadd.f32 %v112_v5, %v100_v4 }
 0x154   :  { %166 = vrcp.f32 %v133_v7 }
 0x155   :  { %115 = vst.msk [vmem:[#allocation2] sm:$0x1] %vm16_vm5, %v113_v8 }
 0x15c   :  { %v131_v10 = vld [vmem:[#allocation2] sm:$0x1] }
 0x15e   :  { %v167_v9 = vpop.eup %166 }
 0x15f   :  { %v135_v11 = vmul.f32 %v167_v9, %v131_v10 }
 0x161   :  { %136 = vst.msk [vmem:[#allocation4] sm:$0x1] %vm16_vm5, %v135_v11 }
 0x162   :  { %179 = shalt.err (!%p176_p4)
}
 0x163   :  { %s180_s21 = scalar_lea.hbm %s253_s2, 16 }
 0x164   :  { %p181_p5 = scmp.ne.s32.totalorder %s253_s2, %s180_s21  ;;  %p184_p6 = scmp.lt.u32.totalorder %s180_s21, %s253_s2 }
 0x166   :  { %p186_p7 = pnand %p184_p6, %p181_p5 }
 0x168   :  { %189 = shalt.err (!%p186_p7)
}
 0x169   :  { %146 = dma.vmem_to_hbm [thread:$0]  %s144_s1, 16, %s253_s2, [#allocation5]  }
 0x16a   :  { %190 = dma.done.wait [#allocation5], 16  }
 0x16b   :  { %191 = vsyncadd [#allocation5], 4294967280 }
 0x16c   :  { %150 = vsyncpa [#allocation5], 1 }

</bundles_post_ra>
